<compile_context>
chip_gen: v5e
topology: v5e:2x2
jax: 0.10.0
libtpu: 0.0.40
codegen_flags: <defaults>
</compile_context>

<pallas_src>
import jax
import jax.numpy as jnp
from jax.experimental import pallas as pl
from jax.experimental.pallas import tpu as pltpu


# ----------------------------------------------------------------------------
# Kernel
# ----------------------------------------------------------------------------
def _classhead_kernel(x_ref, wt_ref, b_ref, o_ref):
    # x_ref : (nb, C, t_hw)   activation tile, lane axis = spatial
    # wt_ref: (O, C)          resident weight (pre-transposed)
    # b_ref : (O, 1) f32      resident bias (broadcast along lanes)
    # o_ref : (nb, O, t_hw)   lane-dense output tile
    w = wt_ref[...]
    b = b_ref[...]
    for i in range(x_ref.shape[0]):          # nb is static & small -> unrolled
        acc = jnp.dot(w, x_ref[i], preferred_element_type=jnp.float32)
        o_ref[i] = (acc + b).astype(o_ref.dtype)


# ----------------------------------------------------------------------------
# Tiling selection (lane tile, batch block, VMEM budget, megacore split)
# ----------------------------------------------------------------------------
def _round_up(v, m):
    return ((v + m - 1) // m) * m


def _select_tiling(N, C, O, HW, itemsize, max_tile_hw, target_step_bytes,
                   vmem_budget_bytes, max_batch_block):
    max_tile_hw = max(128, (max_tile_hw // 128) * 128)
    t_hw = HW if HW <= max_tile_hw else max_tile_hw
    n_hw = -(-HW // t_hw)

    # Batch blocking: only when the whole HW row fits in a single tile.
    nb = 1
    if n_hw == 1:
        per_img = (C + O) * t_hw * itemsize
        nb = int(max(1, min(N, max_batch_block,
                            target_step_bytes // max(1, per_img))))

    # v7x megacore: keep >= 2 programs on the parallel grid when possible.
    if (-(-N // nb)) * n_hw < 2:
        if N >= 2:
            nb = -(-N // 2)                          # -> 2 batch programs
        elif HW >= 256:
            t_hw = _round_up(-(-HW // 2), 128)       # -> 2 spatial programs
            n_hw = -(-HW // t_hw)

    # Double-buffered VMEM footprint (input + output tiles + resident params).
    def footprint(nb_, t_):
        return 2 * nb_ * (C + O) * t_ * itemsize + 2 * (O * C + O) * 4

    while footprint(nb, t_hw) > vmem_budget_bytes and nb > 1:
        nb = -(-nb // 2)
    while footprint(nb, t_hw) > vmem_budget_bytes and t_hw > 128:
        t_hw = max(128, _round_up(t_hw // 2, 128))
        n_hw = -(-HW // t_hw)

    return nb, t_hw, n_hw, footprint(nb, t_hw)


# ----------------------------------------------------------------------------
# Forward wrapper
# ----------------------------------------------------------------------------
def classhead_forward(x_nchw, weight_oc, bias, num_anchors=3, *,
                      max_tile_hw=16384, target_step_bytes=2 << 20,
                      vmem_budget_bytes=20 << 20, max_batch_block=8):
    """x_nchw: (N, C, H, W); weight_oc: (O, C) pre-transposed; bias: (O,) or (O,1)."""
    N, C, H, W = x_nchw.shape
    O = num_anchors * 2
    assert weight_oc.shape == (O, C), weight_oc.shape
    HW = H * W

    # Keep the big activation in place: flatten spatial only (free reshape),
    # no NCHW -> NHWC transpose of x.
    x3d = x_nchw.reshape(N, C, HW)
    b2d = jnp.asarray(bias, jnp.float32).reshape(O, 1)   # no-op if already (O,1) f32

    itemsize = jnp.dtype(x3d.dtype).itemsize
    nb, t_hw, n_hw, vmem_needed = _select_tiling(
        N, C, O, HW, itemsize, max_tile_hw, target_step_bytes,
        vmem_budget_bytes, max_batch_block)
    grid = (pl.cdiv(N, nb), n_hw)

    # Explicit scoped-VMEM limit: covers the footprint with headroom, raises
    # v5e's 16 MiB default, stays well inside v7x's 64 MiB physical VMEM.
    vmem_limit = int(min(max(vmem_needed + (2 << 20), 32 << 20), 60 << 20))

    out3d = pl.pallas_call(
        _classhead_kernel,
        out_shape=jax.ShapeDtypeStruct((N, O, HW), x3d.dtype),
        grid_spec=pltpu.PrefetchScalarGridSpec(
            num_scalar_prefetch=0,
            grid=grid,
            in_specs=[
                # activation tile: (nb, C, t_hw), lane axis = spatial
                pl.BlockSpec((nb, C, t_hw), lambda b, j: (b, 0, j)),
                # weight / bias: full arrays, constant block index -> resident
                # in VMEM across the whole grid (no re-fetch).
                pl.BlockSpec((O, C), lambda b, j: (0, 0)),
                pl.BlockSpec((O, 1), lambda b, j: (0, 0)),
            ],
            out_specs=pl.BlockSpec((nb, O, t_hw), lambda b, j: (b, 0, j)),
        ),
        compiler_params=pltpu.CompilerParams(
            dimension_semantics=("parallel", "parallel"),
            vmem_limit_bytes=vmem_limit,
        ),
    )(x3d, weight_oc, b2d)

    # Shuffle only the tiny O = 2*A channel axis: (N, O, HW) -> (N, HW, O)
    # matches permute(0, 2, 3, 1); the final view is a plain reshape.
    # TODO(synk): fuse the downstream 2-class softmax / bbox+landmark heads /
    # per-level concat here while data is still lane-dense to remove this
    # second HBM pass — that work lives outside ClassHead's forward.
    return jnp.transpose(out3d, (0, 2, 1)).reshape(N, HW * num_anchors, 2)


# ----------------------------------------------------------------------------
# Parameter init (stored pre-transposed for the kernel)
# ----------------------------------------------------------------------------
def init_classhead_params(key, inchannels, num_anchors=3, dtype=jnp.float32):
    """Synthetic params; shapes match nn.Conv2d(C, A*2, 1) in matmul form (O, C)."""
    O = num_anchors * 2
    kw, kb = jax.random.split(key)
    bound = 1.0 / (inchannels ** 0.5)
    weight_oc = jax.random.uniform(kw, (O, inchannels), dtype, -bound, bound)
    bias = jax.random.uniform(kb, (O,), jnp.float32, -bound, bound)
    return weight_oc, bias


# ----------------------------------------------------------------------------
# Self-test
# ----------------------------------------------------------------------------
if __name__ == "__main__":
    key = jax.random.PRNGKey(0)
    k1, k2, k3, k4 = jax.random.split(key, 4)

    num_anchors = 3

    def reference(x, w_oc, b):
        n, c, h, w = x.shape
        r = jnp.einsum("nchw,oc->nhwo", x, w_oc) + b
        return r.reshape(n, h * w * num_anchors, 2)

    C = 32
    w_oc, b = init_classhead_params(k2, C, num_anchors)

    # Case 1: N=2, H=W=16 — single full-HW tile, grid split over batch.
    N, H, W = 2, 16, 16
    x = jax.random.normal(k1, (N, C, H, W), jnp.float32)
    out = jax.block_until_ready(classhead_forward(x, w_oc, b, num_anchors))
    ref = reference(x, w_oc, b)
    assert out.shape == (N, H * W * num_anchors, 2), out.shape
    assert jnp.allclose(out, ref, atol=1e-5, rtol=1e-5)

    # Case 2: HW=400 (not a multiple of 128), forced multi-tile with a partial
    # last lane tile — exercises the pl.cdiv padded-block path.
    x2 = jax.random.normal(k3, (2, C, 20, 20), jnp.float32)
    out2 = jax.block_until_ready(
        classhead_forward(x2, w_oc, b, num_anchors, max_tile_hw=128))
    assert jnp.allclose(out2, reference(x2, w_oc, b), atol=1e-5, rtol=1e-5)

    # Case 2b: same shapes, default tiling (t_hw = full HW = 400).
    out2b = jax.block_until_ready(classhead_forward(x2, w_oc, b, num_anchors))
    assert jnp.allclose(out2b, reference(x2, w_oc, b), atol=1e-5, rtol=1e-5)

    # Case 3: N=4 — batch blocking (nb > 1) with the grid kept >= 2 programs.
    x3 = jax.random.normal(k4, (4, C, 16, 16), jnp.float32)
    out3 = jax.block_until_ready(classhead_forward(x3, w_oc, b, num_anchors))
    assert jnp.allclose(out3, reference(x3, w_oc, b), atol=1e-5, rtol=1e-5)

    # Case 4: N=1 — HW is split into two tiles so both v7x TensorCores get work.
    out4 = jax.block_until_ready(classhead_forward(x[:1], w_oc, b, num_anchors))
    assert jnp.allclose(out4, reference(x[:1], w_oc, b), atol=1e-5, rtol=1e-5)

    # Case 5: bf16 activations/weights — halves HBM traffic (input read and the
    # channels-last output pass); f32 accumulation + f32 bias inside the kernel.
    out_bf16 = jax.block_until_ready(
        classhead_forward(x.astype(jnp.bfloat16), w_oc.astype(jnp.bfloat16),
                          b, num_anchors))
    assert jnp.allclose(out_bf16.astype(jnp.float32), ref, atol=5e-2, rtol=5e-2)

    print("KERNEL_OK")
</pallas_src>

<mosaic_0001>
module attributes {stable_mosaic.version = 11 : i64} {
  func.func @_classhead_kernel(%arg0: i32, %arg1: i32, %arg2: memref<1x32x256xf32, #tpu.memory_space<vmem>>, %arg3: memref<6x32xf32, #tpu.memory_space<vmem>>, %arg4: memref<6x1xf32, #tpu.memory_space<vmem>>, %arg5: memref<1x6x256xf32, #tpu.memory_space<vmem>>) attributes {dimension_semantics = [#tpu.dimension_semantics<parallel>, #tpu.dimension_semantics<parallel>], iteration_bounds = array<i64: 2, 1>, scalar_prefetch = 0 : i64, scratch_operands = 0 : i64, tpu.core_type = #tpu.core_type<tc>, window_params = [{transform_indices = @transform_0, window_bounds = array<i64: 1, 32, 256>}, {pipeline_mode = #tpu.pipeline_mode<synchronous>, transform_indices = @transform_1, window_bounds = array<i64: 6, 32>}, {pipeline_mode = #tpu.pipeline_mode<synchronous>, transform_indices = @transform_2, window_bounds = array<i64: 6, 1>}, {transform_indices = @transform_3, window_bounds = array<i64: 1, 6, 256>}]} {
    %c0 = arith.constant 0 : index
    %c0_0 = arith.constant 0 : index
    %0 = vector.load %arg3[%c0, %c0_0] : memref<6x32xf32, #tpu.memory_space<vmem>>, vector<6x32xf32>
    %c0_1 = arith.constant 0 : index
    %c0_2 = arith.constant 0 : index
    %1 = vector.load %arg4[%c0_1, %c0_2] : memref<6x1xf32, #tpu.memory_space<vmem>>, vector<6x1xf32>
    %c0_3 = arith.constant 0 : index
    %c0_4 = arith.constant 0 : index
    %c0_5 = arith.constant 0 : index
    %2 = vector.load %arg2[%c0_3, %c0_4, %c0_5] : memref<1x32x256xf32, #tpu.memory_space<vmem>>, vector<1x32x256xf32>
    %3 = vector.shape_cast %2 : vector<1x32x256xf32> to vector<32x256xf32>
    %cst = arith.constant dense<0.000000e+00> : vector<6x256xf32>
    %4 = tpu.matmul %0, %3, %cst {dimension_numbers = #tpu.dot_dimension_numbers<[1], [0], [0], [1], [0, 0, 1, 1], [], []>} : vector<6x32xf32>, vector<32x256xf32>, vector<6x256xf32> -> vector<6x256xf32>
    %5 = vector.broadcast %1 : vector<6x1xf32> to vector<6x256xf32>
    %6 = arith.addf %4, %5 : vector<6x256xf32>
    %c0_6 = arith.constant 0 : index
    %c0_7 = arith.constant 0 : index
    %c0_8 = arith.constant 0 : index
    %7 = vector.load %arg5[%c0_6, %c0_7, %c0_8] : memref<1x6x256xf32, #tpu.memory_space<vmem>>, vector<1x6x256xf32>
    %8 = vector.shape_cast %7 : vector<1x6x256xf32> to vector<6x256xf32>
    %9 = vector.shape_cast %6 : vector<6x256xf32> to vector<1x6x256xf32>
    tpu.vector_store %arg5[%c0_6, %c0_7, %c0_8], %9 {strides = array<i32>} : memref<1x6x256xf32, #tpu.memory_space<vmem>>, vector<1x6x256xf32>,
    return
  }
  func.func @transform_0(%arg0: i32, %arg1: i32) -> (i32, i32, i32) {
    %c0_i32 = arith.constant 0 : i32
    %c0_i32_0 = arith.constant 0 : i32
    return %arg0, %c0_i32, %arg1 : i32, i32, i32
  }
  func.func @transform_1(%arg0: i32, %arg1: i32) -> (i32, i32) {
    %c0_i32 = arith.constant 0 : i32
    %c0_i32_0 = arith.constant 0 : i32
    %c0_i32_1 = arith.constant 0 : i32
    return %c0_i32, %c0_i32_0 : i32, i32
  }
  func.func @transform_2(%arg0: i32, %arg1: i32) -> (i32, i32) {
    %c0_i32 = arith.constant 0 : i32
    %c0_i32_0 = arith.constant 0 : i32
    %c0_i32_1 = arith.constant 0 : i32
    return %c0_i32, %c0_i32_0 : i32, i32
  }
  func.func @transform_3(%arg0: i32, %arg1: i32) -> (i32, i32, i32) {
    %c0_i32 = arith.constant 0 : i32
    %c0_i32_0 = arith.constant 0 : i32
    return %arg0, %c0_i32, %arg1 : i32, i32, i32
  }
}

</mosaic_0001>

<bundles_post_ra>
// kernel: tpu_custom_call.1
= control target key start
LH: loop header
LB: loop body
LE: loop exit
PB: predicated region body
PF: predicated region fallthrough
CT: control target
= control target key end

     0   :  { %8 = vsyncpa [#allocation3], 0  ;;  %s652_s0 = inlined_call_operand.hbm [shape: f32[2,32,256], index: 0, kind: input, shape index: {}]   ;;  %s653_s1 = inlined_call_operand.vmem [shape: f32[6,32], index: 1, kind: input, shape index: {}]   ;;  %s654_s2 = inlined_call_operand.vmem [shape: f32[6,1], index: 2, kind: input, shape index: {}]   ;;  %s655_s3 = inlined_call_operand.vmem [shape: f32[2,6,256], index: 3, kind: output, shape index: {}]  }
   0x1   :  { %10 = vsyncpa [#allocation3 + $0x1], 0  ;;  %s558_s12 = smov 0   ;;  %s560_s13 = smov 0  }
   0x2   :  { %s562_s14 = smov 0   ;;  %s564_s15 = smov 0  }
   0x3   :  { %s566_s16 = smov 0   ;;  %s568_s17 = smov 0  }
   0x4 LB: > { %s377_s18 = sadd.s32 4294967295, %s533_s17   ;;  %s28_s19 = sadd.s32 1, %s529_s16  ;;  %s533_s17 = sphi %s568_s17, %s16_s17   ;;  %s529_s16 = sphi %s566_s16, %s662_s16   ;;  %s525_s15 = sphi %s564_s15, %s661_s15   ;;  %s521_s14 = sphi %s562_s14, %s660_s14   ;;  %s517_s13 = sphi %s560_s13, %s659_s13   ;;  %s513_s12 = sphi %s558_s12, %s658_s12  }
   0x5   : > { %p30_p0 = scmp.ge.s32.totalorder %s28_s19, 2  ;;  %s37_s20 = sadd.s32 1, %s521_s14 }
   0x6   : > { %p44_p1 = scmp.ne.s32.totalorder %s521_s14, %s517_s13  ;;  %p45_p2 = scmp.eq.s32.totalorder %s533_s17, 0 }
   0x7   : > { %s664_s19 = smov (%p30_p0, %s28_s19), 0  ;;  %p50_p4 = scmp.ne.s32.totalorder %s517_s13, %s513_s12 }
   0x8   : > { %p594_p3 = por %p45_p2, %p44_p1  ;;  %s32_s22 = ssub.s32 %s529_s16, %s664_s19 }
   0x9   : > { %p51_p5 = scmp.eq.s32.totalorder %s377_s18, 0  ;;  %p35_p6 = scmp.eq.s32.totalorder %s32_s22, 0 }
   0xa   : > { %p400_p8 = scmp.lt.s32.totalorder %s533_s17, 2  ;;  %s150_s25 = sand.u32 1, %s521_s14  }
   0xb   : > { %p601_p7 = por %p51_p5, %p50_p4  ;;  %s392_s26 = sshll.u32 %s529_s16, 6 }
   0xc   : > { %s607_s24 = scalar_select %p35_p6, %s521_s14, %s37_s20  }
   0xd   : > { %s381_s27 = sshll.u32 %s150_s25, 6  ;;  %s161_s30 = scalar_lea.hbm %s652_s0, %s392_s26 }
   0xe   : > { %s162_s4 = sshll.u32 %s161_s30, 4  ;;  %s154_s5 = scalar_lea.vmem [#allocation2], %s381_s27  ;;  %s163_s4 = int_to_ptr.hbm [resolvable:$true] %s162_s4 }
   0xf   : > { %s164_s6 = sshll.u32 %s154_s5, 4  ;;  %p397_p9 = pnand %p400_p8, %p594_p3  ;;  %s165_s6 = int_to_ptr.vmem [resolvable:$true] %s164_s6 }
  0x10   : > { %p384_p10 = scmp.ge.s32.totalorder %s533_s17, 1  ;;  %p172_p11 = scmp.lt.s32.totalorder %s533_s17, 3 }
  0x11   : > { %s151_s7 = scalar_lea.sflag [#allocation3], %s150_s25  ;;  %s535_s8 = smov 256  }
  0x12   : > { %s536_s9 = smov 16   ;;  %p173_p12 = pnand %p384_p10, %p172_p11 }
  0x13   : > { %399 = dma.hbm_to_vmem [thread:$0]  (!%p397_p9), %s163_s4, 1024, %s165_s6, %s151_s7, %s535_s8, %s535_s8, %s536_s9  }
  0x14   : > { %176 = sbr.rel (%p173_p12) target bundleno = 164 (0xa4), region = 32  ;;  %s178_s10 = sand.u32 (!%p173_p12), 1, %s517_s13  }
  0x15   : > { %s385_s11 = sshll.u32 (!%p173_p12), %s178_s10, 6  ;;  %s179_s12 = scalar_lea.sflag (!%p173_p12), [#allocation3], %s178_s10 }
  0x16   : > { %s182_s18 = scalar_lea.vmem (!%p173_p12), [#allocation2], %s385_s11 }
  0x19   : > { %508 = dma.done.wait (%p601_p7), %s179_s12, 1024  }
  0x1a   : > { %510 = vsyncadd (%p601_p7), %s179_s12, 4294966272  ;;  %v537_v0 = vmov 0   ;;  %v229_v1 = vld [vmem:[%s182_s18 + $0x30] sm:$0xff]  ;;  %v230_v2 = vld [vmem:[%s182_s18 + $0x38] sm:$0xff]  ;;  %vm236_vm0 = vcmask 261120   ;;  %p212_p13 = scmp.lt.s32.totalorder %s525_s15, 1 }
  0x1b   : > { %452 = vset.pattern.permute.xlu0 %v537_v0  ;;  %v227_v3 = vld [vmem:[%s182_s18 + $0x20] sm:$0xff]  ;;  %252 = vmatpush.msra.mxu0 %v229_v1  ;;  %v228_v4 = vld [vmem:[%s182_s18 + $0x28] sm:$0xff]  ;;  %v225_v5 = vld [vmem:[%s182_s18 + $0x10] sm:$0xff] }
  0x1c   : > { %272 = vmatpush.msra.mxu1 %v230_v2  ;;  %v226_v6 = vld [vmem:[%s182_s18 + $0x18] sm:$0xff]  ;;  %v222_v7 = vld [vmem:[%s654_s2] sm:$0x3f]  ;;  %v224_v9 = vld [vmem:[%s182_s18 + $0x8] sm:$0xff]  ;;  %s666_s15 = smov (!%p212_p13, %s525_s15), 1 }
  0x1d   : > { %253 = vmatpush.msra.mxu0 %v227_v3  ;;  %v223_v8 = vld [vmem:[%s182_s18] sm:$0xff]  ;;  %233 = vperm.xlu0 %452, %v222_v7   ;;  %s393_s25 = sshll.u32 %s666_s15, 4 }
  0x1e   : > { %273 = vmatpush.msra.mxu1 %v228_v4  ;;  %v221_v10 = vld [vmem:[%s653_s1] sm:$0x3f]  ;;  %s219_s28 = scalar_lea.vmem %s655_s3, %s393_s25 }
  0x1f   : > { %254 = vmatpush.msra.mxu0 %v225_v5 }
  0x20   : > { %274 = vmatpush.msra.mxu1 %v226_v6 }
  0x21   : > { %255 = vmatpush.msra.mxu0 %v223_v8 }
  0x22   : > { %275 = vmatpush.msra.mxu1 %v224_v9  ;;  %388 = vmatmul.msk.f32.vlgmr.msra.gmra.mxu0 %vm236_vm0, %v221_v10 }
  0x23   : > { %389 = vmatmul.msk.f32.vlgmr.msra.gmra.mxu1 %vm236_vm0, %v221_v10 }
  0x8f   : > { %v234_v11 = vpop.permute.xlu0 %233 }
  0x9f   : > { %v257_v12 = vpop.f32.mrf.mxu0 }
  0xa0   : > { %v277_v13 = vpop.f32.mrf.mxu1  ;;  %v258_v14 = vadd.f32 %v257_v12, %v234_v11 }
  0xa1   : > { %v278_v15 = vadd.f32 %v277_v13, %v234_v11 }
  0xa2   : > { %280 = vst [vmem:[%s219_s28] sm:$0x3f] %v258_v14 }
  0xa3   : > { %281 = vst [vmem:[%s219_s28 + $0x8] sm:$0x3f] %v278_v15 }
  0xa4 PF: > { %s16_s17 = sadd.s32 1, %s533_s17   ;;  %s658_s12 = smov %s517_s13 }
  0xa5   : > { %p13_p0 = scmp.ge.s32.totalorder %s16_s17, 4   ;;  %s659_s13 = smov %s521_s14 }
  0xa6   : > { %s660_s14 = smov %s607_s24  ;;  %s661_s15 = smov %s529_s16 }
  0xa7   : > { %s662_s16 = smov %s664_s19  ;;  %15 = sbr.rel (!%p13_p0) target bundleno = 4 (0x4), region = 72 }
  0xac   :  { %312 = vsyncpa [#allocation3], 1 }
  0xad   :  { %314 = vsyncpa [#allocation3 + $0x1], 1 }

</bundles_post_ra>
